<compile_context>
chip_gen: v7x
topology: tpu7x:2x2x1
jax: 0.10.0
libtpu: 0.0.40
codegen_flags: <defaults>
</compile_context>

<pallas_src>
import functools

import jax
import jax.numpy as jnp
from jax.experimental import pallas as pl
from jax.experimental.pallas import tpu as pltpu


def _round_up(v, m):
    return (v + m - 1) // m * m


# ---------------------------------------------------------------------------
# Best-effort hardware probing (safe fallbacks; never changes numerics).
# ---------------------------------------------------------------------------
def _device_kind():
    try:
        return jax.devices()[0].device_kind.lower()
    except Exception:
        return ""


def _vmem_capacity_bytes():
    try:
        return int(pltpu.get_tpu_info().vmem_capacity_bytes)
    except Exception:
        pass
    kind = _device_kind()
    if "v7" in kind:
        return 64 * 1024 * 1024
    if kind:
        return 128 * 1024 * 1024  # v5e / v6e / v5p class parts
    return 64 * 1024 * 1024       # unknown -> conservative


def _has_bf16_vpu():
    kind = _device_kind()
    # v5e ("v5 lite") has no bf16 VALU; keep ReLU in f32 there.
    if "v5 lite" in kind or "v5e" in kind or "v5lite" in kind:
        return False
    return True


def _num_tensorcores():
    return 2 if "v7" in _device_kind() else 1


def _supports_pipeline_mode():
    try:
        pl.BlockSpec((16, 128), lambda i: (0, 0), pipeline_mode=pl.Buffered(1))
        return True
    except Exception:
        return False


_WEIGHT_BUFFERS = 1 if _supports_pipeline_mode() else 2


def _weight_spec(shape, index_map):
    """BlockSpec for a VMEM-resident weight: constant index_map, 1 buffer."""
    if _WEIGHT_BUFFERS == 1:
        return pl.BlockSpec(shape, index_map, pipeline_mode=pl.Buffered(1))
    return pl.BlockSpec(shape, index_map)


# ---------------------------------------------------------------------------
# Kernels
# ---------------------------------------------------------------------------
def _relu_cast(acc_f32, compute_dtype, low_precision):
    if low_precision:
        # bf16 VALU (v6e/v7x): half the vector-ALU work; bit-identical result.
        return jnp.maximum(acc_f32.astype(compute_dtype), 0)
    return jnp.maximum(acc_f32, 0.0).astype(compute_dtype)


def _make_resident_kernel(num_weights, compute_dtype, relu_low_precision):
    """All weights VMEM-resident; 1-D grid over batch tiles."""

    def kernel(*refs):
        x_ref = refs[0]
        w_refs = refs[1:1 + num_weights]
        o_ref = refs[1 + num_weights]

        h = x_ref[...].astype(compute_dtype)          # cheap VPU cast, hidden under MXU
        acc = jnp.dot(h, w_refs[0][...], preferred_element_type=jnp.float32)
        for w_ref in w_refs[1:]:
            h = _relu_cast(acc, compute_dtype, relu_low_precision)
            acc = jnp.dot(h, w_ref[...], preferred_element_type=jnp.float32)
        o_ref[...] = acc.astype(o_ref.dtype)

    return kernel


def _make_ktiled_kernel(num_weights, compute_dtype, relu_low_precision):
    """First layer K-tiled (grid=(M, K)); remaining weights resident."""

    def kernel(*refs):
        x_ref = refs[0]
        w_refs = refs[1:1 + num_weights]
        o_ref = refs[1 + num_weights]
        acc_ref = refs[2 + num_weights]

        k = pl.program_id(1)

        @pl.when(k == 0)
        def _():
            acc_ref[...] = jnp.zeros_like(acc_ref)

        acc_ref[...] += jnp.dot(x_ref[...].astype(compute_dtype), w_refs[0][...],
                                preferred_element_type=jnp.float32)

        @pl.when(k == pl.num_programs(1) - 1)
        def _():
            acc = acc_ref[...]
            for w_ref in w_refs[1:]:
                h = _relu_cast(acc, compute_dtype, relu_low_precision)
                acc = jnp.dot(h, w_ref[...], preferred_element_type=jnp.float32)
            o_ref[...] = acc.astype(o_ref.dtype)

    return kernel


# ---------------------------------------------------------------------------
# Parameter preparation (done ONCE, outside the per-step jit)
# ---------------------------------------------------------------------------
def prepare_mlp_weights(weights, compute_dtype=jnp.bfloat16):
    """Zero-pad every feature dim to a multiple of 128 and cast to bf16.

    Hoisted out of the forward path so each call does not re-read the f32
    weights from HBM and rewrite padded bf16 copies.
    Input layout: weights[i] has shape [d_in_i, d_out_i] (transpose of torch).
    """
    prepared = []
    for w in weights:
        d_in, d_out = w.shape
        p_in, p_out = _round_up(d_in, 128), _round_up(d_out, 128)
        if (d_in, d_out) == (p_in, p_out) and w.dtype == jnp.dtype(compute_dtype):
            prepared.append(w)
        else:
            wp = jnp.zeros((p_in, p_out), compute_dtype)
            wp = wp.at[:d_in, :d_out].set(w.astype(compute_dtype))
            prepared.append(wp)
    return prepared


# ---------------------------------------------------------------------------
# Forward
# ---------------------------------------------------------------------------
def mlp_forward(x, weights_p, *, out_dim, tm=512, force_k_tiling=False, k_tile=512):
    """MLP forward pass.

    x:         [B, ...]  (flattened from dim 1 on, like torch.flatten(x, 1))
    weights_p: list of PRE-PADDED (multiples of 128), pre-cast bf16 weights
               in [in, out] layout, from prepare_mlp_weights().
    out_dim:   true (unpadded) output dim, static Python int.
    Returns:   [B, out_dim] in x.dtype.
    """
    b = x.shape[0]
    x_flat = x.reshape(b, -1)
    in_dim = x_flat.shape[1]
    in_pad = _round_up(in_dim, 128)

    num_w = len(weights_p)
    assert num_w >= 1
    assert weights_p[0].shape[0] == in_pad, "weights must be prepared for this in_dim"
    dims_p = [in_pad] + [w.shape[1] for w in weights_p]
    for i, w in enumerate(weights_p):
        assert w.shape[0] == dims_p[i] and w.shape[1] % 128 == 0, "weights not padded"
    out_pad = dims_p[-1]
    assert out_dim <= out_pad

    compute_dtype = weights_p[0].dtype
    relu_lp = _has_bf16_vpu()
    w_itemsize = jnp.dtype(compute_dtype).itemsize
    x_itemsize = jnp.dtype(x.dtype).itemsize
    out_itemsize = jnp.dtype(x.dtype).itemsize
    max_dim_p = max(dims_p)

    weight_bytes = sum(int(w.size) * w_itemsize for w in weights_p)
    weight_resident_bytes = weight_bytes * _WEIGHT_BUFFERS
    w0_bytes = int(weights_p[0].size) * w_itemsize

    # --- generation-aware VMEM budget (headroom for compiler scratch) -------
    vmem_cap = _vmem_capacity_bytes()
    budget = int(vmem_cap * 0.8)

    tm = max(16, _round_up(int(tm), 16))
    tile_candidates = sorted({t for t in (tm, 512, 256, 128, 64, 32, 16) if t <= tm},
                             reverse=True)

    def _resident_tile_bytes(t):
        x_tile = 2 * t * in_pad * x_itemsize          # double-buffered x tile
        o_tile = 2 * t * out_pad * out_itemsize       # double-buffered out tile
        inter = 3 * t * max_dim_p * 4                 # f32 acc + temps headroom
        return x_tile + o_tile + inter

    resident_tm = None
    for t in tile_candidates:
        if weight_resident_bytes + _resident_tile_bytes(t) <= budget:
            resident_tm = t
            break

    use_k = (force_k_tiling
             or resident_tm is None
             or (resident_tm < 128 and 2 * w0_bytes >= weight_bytes))

    scratch = []
    if use_k:
        # ---- K-tiled first layer, resident tail --------------------------------
        tk = max(128, _round_up(min(int(k_tile), in_pad), 128))
        while in_pad % tk != 0:
            tk -= 128
        h0_pad = dims_p[1]
        rest_bytes = (weight_bytes - w0_bytes) * _WEIGHT_BUFFERS
        tail_max = max(dims_p[1:]) if len(dims_p) > 1 else out_pad

        def _k_tile_bytes(t):
            x_tile = 2 * t * tk * x_itemsize
            o_tile = 2 * t * out_pad * out_itemsize
            w0_tile = 2 * tk * h0_pad * w_itemsize    # streamed, double-buffered
            acc = t * h0_pad * 4
            inter = 3 * t * tail_max * 4
            return x_tile + o_tile + w0_tile + acc + inter

        tm_max = 16
        for t in tile_candidates:
            if rest_bytes + _k_tile_bytes(t) <= budget:
                tm_max = t
                break
    else:
        tm_max = resident_tm

    # --- choose block_m to minimise batch padding (ties -> larger tile) ------
    bm_candidates = [t for t in tile_candidates if t <= tm_max] or [16]
    block_m, b_pad = bm_candidates[0], _round_up(b, bm_candidates[0])
    for t in bm_candidates:
        bp = _round_up(b, t)
        if bp < b_pad:
            block_m, b_pad = t, bp

    m_tiles = b_pad // block_m
    # v7x: make sure both TensorCores get work when the batch fits one tile.
    if _num_tensorcores() > 1 and m_tiles == 1 and block_m >= 32:
        block_m //= 2
        m_tiles = b_pad // block_m

    # --- input: pass straight through when possible, pad+cast otherwise ------
    needs_pad = (in_dim != in_pad) or (b != b_pad)
    if needs_pad:
        x_in = jnp.zeros((b_pad, in_pad), compute_dtype)
        x_in = x_in.at[:b, :in_dim].set(x_flat.astype(compute_dtype))
    else:
        x_in = x_flat                                 # original dtype; cast in-kernel
    x_in_itemsize = jnp.dtype(x_in.dtype).itemsize

    # --- cost estimate --------------------------------------------------------
    flops = 2 * b_pad * sum(dims_p[i] * dims_p[i + 1] for i in range(num_w))
    bytes_accessed = (int(x_in.size) * x_in_itemsize + weight_bytes
                      + b_pad * out_pad * out_itemsize)
    cost = pl.CostEstimate(flops=int(flops), transcendentals=0,
                           bytes_accessed=int(bytes_accessed))

    # --- specs / kernel / VMEM estimate (counting real buffer counts) --------
    if use_k:
        k_tiles = in_pad // tk
        grid = (m_tiles, k_tiles)
        in_specs = [pl.BlockSpec((block_m, tk), lambda i, k: (i, k)),
                    pl.BlockSpec((tk, h0_pad), lambda i, k: (k, 0))]
        for w in weights_p[1:]:
            in_specs.append(_weight_spec(w.shape, lambda i, k: (0, 0)))
        out_spec = pl.BlockSpec((block_m, out_pad), lambda i, k: (i, 0))
        scratch = [pltpu.VMEM((block_m, h0_pad), jnp.float32)]
        kernel = _make_ktiled_kernel(num_w, compute_dtype, relu_lp)
        dim_sem = ("parallel", "arbitrary")
        est_vmem = (rest_bytes
                    + 2 * block_m * tk * x_in_itemsize
                    + 2 * tk * h0_pad * w_itemsize
                    + 2 * block_m * out_pad * out_itemsize
                    + block_m * h0_pad * 4
                    + 3 * block_m * tail_max * 4)
    else:
        grid = (m_tiles,)
        in_specs = [pl.BlockSpec((block_m, in_pad), lambda i: (i, 0))]
        for w in weights_p:
            in_specs.append(_weight_spec(w.shape, lambda i: (0, 0)))
        out_spec = pl.BlockSpec((block_m, out_pad), lambda i: (i, 0))
        kernel = _make_resident_kernel(num_w, compute_dtype, relu_lp)
        dim_sem = ("parallel",)
        est_vmem = (weight_resident_bytes
                    + 2 * block_m * in_pad * x_in_itemsize
                    + 2 * block_m * out_pad * out_itemsize
                    + 3 * block_m * max_dim_p * 4)

    # Always set the scoped limit from the (corrected) estimate; never below
    # the 32 MiB default, never above the generation-aware budget.
    vmem_limit = min(budget, max(int(est_vmem * 1.25), 32 * 1024 * 1024))

    out = pl.pallas_call(
        kernel,
        out_shape=jax.ShapeDtypeStruct((b_pad, out_pad), x.dtype),
        grid=grid,
        in_specs=in_specs,
        out_specs=out_spec,
        scratch_shapes=scratch,
        compiler_params=pltpu.CompilerParams(
            dimension_semantics=dim_sem,
            vmem_limit_bytes=int(vmem_limit),
        ),
        cost_estimate=cost,
    )(x_in, *weights_p)

    return out[:b, :out_dim]


# ---------------------------------------------------------------------------
# Init + pure-JAX reference
# ---------------------------------------------------------------------------
def init_mlp_weights(key, in_dim, out_dim, hidden_sizes, dtype=jnp.float32):
    """Synthetic params matching MLP.__init__ shapes, in [in, out] layout."""
    dims = [in_dim] + list(hidden_sizes) + [out_dim]
    weights = []
    for i in range(len(dims) - 1):
        key, sub = jax.random.split(key)
        bound = 1.0 / (dims[i] ** 0.5)
        w = jax.random.uniform(
            sub, (dims[i], dims[i + 1]), dtype=dtype, minval=-bound, maxval=bound)
        weights.append(w)
    return weights


def mlp_reference(x, weights, compute_dtype=jnp.bfloat16):
    """Pure-JAX reference using the same mixed precision as the kernel."""
    h = x.reshape(x.shape[0], -1).astype(compute_dtype)
    for i, w in enumerate(weights):
        if i > 0:
            h = jnp.maximum(h.astype(jnp.float32), 0.0).astype(compute_dtype)
        h = jnp.dot(h, w.astype(compute_dtype), preferred_element_type=jnp.float32)
    return h.astype(x.dtype)


if __name__ == "__main__":
    key = jax.random.PRNGKey(0)
    k_x, k_w = jax.random.split(key)

    # Small config consistent with the module: flatten a [B, C, H, W] input.
    B, C, H, W = 2, 4, 16, 16
    in_dim = C * H * W                 # 1024
    hidden_sizes = [32, 32]
    out_dim = 8

    x = jax.random.normal(k_x, (B, C, H, W), dtype=jnp.float32)
    weights = init_mlp_weights(k_w, in_dim, out_dim, hidden_sizes)
    weights_p = prepare_mlp_weights(weights)      # one-time pad/cast, outside jit

    ref = mlp_reference(x, weights)

    # Path 1: fully VMEM-resident weights (default for small/medium MLPs).
    fwd = jax.jit(functools.partial(mlp_forward, out_dim=out_dim))
    out = jax.block_until_ready(fwd(x, weights_p))
    assert out.shape == (B, out_dim), out.shape
    assert jnp.allclose(out, ref, atol=1e-2, rtol=1e-2), "resident path mismatch"

    # Path 2: K-tiled first layer (the large-weight / v7x fallback), forced so
    # the accumulator path is exercised and checked too.
    fwd_k = jax.jit(functools.partial(mlp_forward, out_dim=out_dim,
                                      force_k_tiling=True, k_tile=256))
    out_k = jax.block_until_ready(fwd_k(x, weights_p))
    assert out_k.shape == (B, out_dim), out_k.shape
    assert jnp.allclose(out_k, ref, atol=1e-2, rtol=1e-2), "k-tiled path mismatch"

    print("KERNEL_OK")
</pallas_src>

<mosaic_0001>
module attributes {stable_mosaic.version = 11 : i64} {
  func.func @kernel(%arg0: i32, %arg1: memref<16x1024xbf16, #tpu.memory_space<vmem>>, %arg2: memref<1024x128xbf16, #tpu.memory_space<vmem>>, %arg3: memref<128x128xbf16, #tpu.memory_space<vmem>>, %arg4: memref<128x128xbf16, #tpu.memory_space<vmem>>, %arg5: memref<16x128xf32, #tpu.memory_space<vmem>>) attributes {dimension_semantics = [#tpu.dimension_semantics<parallel>], iteration_bounds = array<i64: 1>, scalar_prefetch = 0 : i64, scratch_operands = 0 : i64, tpu.core_type = #tpu.core_type<tc>, window_params = [{transform_indices = @transform_0, window_bounds = array<i64: 16, 1024>}, {pipeline_mode = #tpu.pipeline_mode<synchronous>, transform_indices = @transform_1, window_bounds = array<i64: 1024, 128>}, {pipeline_mode = #tpu.pipeline_mode<synchronous>, transform_indices = @transform_2, window_bounds = array<i64: 128, 128>}, {pipeline_mode = #tpu.pipeline_mode<synchronous>, transform_indices = @transform_3, window_bounds = array<i64: 128, 128>}, {transform_indices = @transform_4, window_bounds = array<i64: 16, 128>}]} {
    %c0 = arith.constant 0 : index
    %c0_0 = arith.constant 0 : index
    %0 = vector.load %arg1[%c0, %c0_0] : memref<16x1024xbf16, #tpu.memory_space<vmem>>, vector<16x1024xbf16>
    %c0_1 = arith.constant 0 : index
    %c0_2 = arith.constant 0 : index
    %1 = vector.load %arg2[%c0_1, %c0_2] : memref<1024x128xbf16, #tpu.memory_space<vmem>>, vector<1024x128xbf16>
    %cst = arith.constant dense<0.000000e+00> : vector<16x128xf32>
    %2 = tpu.matmul %0, %1, %cst {dimension_numbers = #tpu.dot_dimension_numbers<[1], [0], [0], [1], [0, 0, 1, 1], [], []>} : vector<16x1024xbf16>, vector<1024x128xbf16>, vector<16x128xf32> -> vector<16x128xf32>
    %3 = arith.truncf %2 : vector<16x128xf32> to vector<16x128xbf16>
    %cst_3 = arith.constant 0.000000e+00 : bf16
    %4 = vector.broadcast %cst_3 : bf16 to vector<16x128xbf16>
    %5 = arith.maximumf %3, %4 : vector<16x128xbf16>
    %c0_4 = arith.constant 0 : index
    %c0_5 = arith.constant 0 : index
    %6 = vector.load %arg3[%c0_4, %c0_5] : memref<128x128xbf16, #tpu.memory_space<vmem>>, vector<128x128xbf16>
    %cst_6 = arith.constant dense<0.000000e+00> : vector<16x128xf32>
    %7 = tpu.matmul %5, %6, %cst_6 {dimension_numbers = #tpu.dot_dimension_numbers<[1], [0], [0], [1], [0, 0, 1, 1], [], []>} : vector<16x128xbf16>, vector<128x128xbf16>, vector<16x128xf32> -> vector<16x128xf32>
    %8 = arith.truncf %7 : vector<16x128xf32> to vector<16x128xbf16>
    %cst_7 = arith.constant 0.000000e+00 : bf16
    %9 = vector.broadcast %cst_7 : bf16 to vector<16x128xbf16>
    %10 = arith.maximumf %8, %9 : vector<16x128xbf16>
    %c0_8 = arith.constant 0 : index
    %c0_9 = arith.constant 0 : index
    %11 = vector.load %arg4[%c0_8, %c0_9] : memref<128x128xbf16, #tpu.memory_space<vmem>>, vector<128x128xbf16>
    %cst_10 = arith.constant dense<0.000000e+00> : vector<16x128xf32>
    %12 = tpu.matmul %10, %11, %cst_10 {dimension_numbers = #tpu.dot_dimension_numbers<[1], [0], [0], [1], [0, 0, 1, 1], [], []>} : vector<16x128xbf16>, vector<128x128xbf16>, vector<16x128xf32> -> vector<16x128xf32>
    %c0_11 = arith.constant 0 : index
    %c0_12 = arith.constant 0 : index
    %13 = vector.load %arg5[%c0_11, %c0_12] : memref<16x128xf32, #tpu.memory_space<vmem>>, vector<16x128xf32>
    tpu.vector_store %arg5[%c0_11, %c0_12], %12 {strides = array<i32>} : memref<16x128xf32, #tpu.memory_space<vmem>>, vector<16x128xf32>,
    return
  }
  func.func @transform_0(%arg0: i32) -> (i32, i32) {
    %c0_i32 = arith.constant 0 : i32
    %c0_i32_0 = arith.constant 0 : i32
    return %arg0, %c0_i32 : i32, i32
  }
  func.func @transform_1(%arg0: i32) -> (i32, i32) {
    %c0_i32 = arith.constant 0 : i32
    %c0_i32_0 = arith.constant 0 : i32
    %c0_i32_1 = arith.constant 0 : i32
    return %c0_i32, %c0_i32_0 : i32, i32
  }
  func.func @transform_2(%arg0: i32) -> (i32, i32) {
    %c0_i32 = arith.constant 0 : i32
    %c0_i32_0 = arith.constant 0 : i32
    %c0_i32_1 = arith.constant 0 : i32
    return %c0_i32, %c0_i32_0 : i32, i32
  }
  func.func @transform_3(%arg0: i32) -> (i32, i32) {
    %c0_i32 = arith.constant 0 : i32
    %c0_i32_0 = arith.constant 0 : i32
    %c0_i32_1 = arith.constant 0 : i32
    return %c0_i32, %c0_i32_0 : i32, i32
  }
  func.func @transform_4(%arg0: i32) -> (i32, i32) {
    %c0_i32 = arith.constant 0 : i32
    %c0_i32_0 = arith.constant 0 : i32
    return %arg0, %c0_i32 : i32, i32
  }
}

</mosaic_0001>

<bundles_post_ra>
// kernel: mlp_forward.1
= control target key start
LH: loop header
LB: loop body
LE: loop exit
PB: predicated region body
PF: predicated region fallthrough
CT: control target
= control target key end

     0   :  { %9 = vsyncpa [#allocation3], 0  ;;  %s1321_s15 = smov [#allocation2]   ;;  %s1460_s0 = inlined_call_operand.vmem [shape: bf16[16,1024], index: 0, kind: input, shape index: {}]   ;;  %s1461_s1 = inlined_call_operand.hbm [shape: bf16[1024,128], index: 1, kind: input, shape index: {}]   ;;  %s1462_s2 = inlined_call_operand.vmem [shape: bf16[128,128], index: 2, kind: input, shape index: {}]   ;;  %s1463_s3 = inlined_call_operand.vmem [shape: bf16[128,128], index: 3, kind: input, shape index: {}]   ;;  %s1464_s4 = inlined_call_operand.vmem [shape: f32[16,128], index: 4, kind: output, shape index: {}]  }
   0x1   :  { %s17_s16 = sshll.u32 %s1321_s15, 4  ;;  %s1297_s19 = scalar_lea.hbm %s1461_s1, 8192  ;;  %s18_s16 = int_to_ptr.vmem [resolvable:$true] %s17_s16 }
   0x2   :  { %p1298_p0 = scmp.ne.s32.totalorder %s1461_s1, %s1297_s19  ;;  %p1301_p1 = scmp.lt.u32.totalorder %s1297_s19, %s1461_s1 }
   0x4   :  { %p1303_p2 = pnand %p1301_p1, %p1298_p0 }
   0x6   :  { %1306 = shalt.err (!%p1303_p2)
}
   0x7   :  { %s1307_s24 = scalar_lea.vmem %s18_s16, 8192  ;;  %p1312_p4 = scmp.lt.s32.totalorder %s18_s16, %s18_s16 }
   0x8   :  { %p1308_p3 = scmp.ne.s32.totalorder %s18_s16, %s1307_s24  ;;  %p1313_p5 = scmp.lt.s32.totalorder %s1307_s24, %s1307_s24 }
   0xa   :  { %p1314_p6 = por %p1313_p5, %p1312_p4 }
   0xc   :  { %p1315_p7 = pnand %p1314_p6, %p1308_p3 }
   0xe   :  { %1318 = shalt.err (!%p1315_p7)
}
   0xf   :  { %s1322_s25 = smov 64   ;;  %s1323_s26 = smov 4  }
  0x10   :  { %23 = dma.hbm_to_vmem [thread:$0]  %s1461_s1, 8192, %s18_s16, [#allocation3], %s1322_s25, %s1322_s25, %s1323_s26  }
  0x11   :  { %1319 = dma.done.wait [#allocation3], 8192  }
  0x12   :  { %1320 = vsyncadd [#allocation3], 4294959104  ;;  %v1217_v0 = vld [vmem:[#allocation2 + $0x40] sm:$0xff]   ;;  %v1221_v4 = vld [vmem:[#allocation2 + $0x48] sm:$0xff]   ;;  %vm1325_vm0 = vmmov 0  }
  0x13   :  { %v1218_v1 = vld [vmem:[#allocation2 + $0xc0] sm:$0xff]   ;;  %1065 = vmatprep.subr.bf16.mxu0 %v1217_v0  ;;  %v1222_v5 = vld [vmem:[#allocation2 + $0xc8] sm:$0xff]   ;;  %v1225_v8 = vld [vmem:[#allocation2 + $0x50] sm:$0xff]  }
  0x14   :  { %v1219_v2 = vld [vmem:[#allocation2] sm:$0xff]   ;;  %1087 = vmatprep.subr.bf16.mxu1 %v1218_v1  ;;  %v1223_v6 = vld [vmem:[#allocation2 + $0x8] sm:$0xff]   ;;  %v1226_v9 = vld [vmem:[#allocation2 + $0xd0] sm:$0xff]  }
  0x15   :  { %v1220_v3 = vld [vmem:[#allocation2 + $0x80] sm:$0xff]   ;;  %1066 = vmatpush3.bf16.msra.mxu0 %v1219_v2  ;;  %v1224_v7 = vld [vmem:[#allocation2 + $0x88] sm:$0xff]   ;;  %v1227_v10 = vld [vmem:[#allocation2 + $0x10] sm:$0xff]  }
  0x16   :  { %1088 = vmatpush3.bf16.msra.mxu1 %v1220_v3  ;;  %1067 = vmatprep.subr.bf16.mxu0 %v1221_v4  ;;  %v1228_v11 = vld [vmem:[#allocation2 + $0x90] sm:$0xff]   ;;  %v1229_v12 = vld [vmem:[#allocation2 + $0x58] sm:$0xff]   ;;  %v1233_v16 = vld [vmem:[#allocation2 + $0x60] sm:$0xff]  }
  0x17   :  { %1089 = vmatprep.subr.bf16.mxu1 %v1222_v5  ;;  %v1230_v13 = vld [vmem:[#allocation2 + $0xd8] sm:$0xff]   ;;  %v1234_v17 = vld [vmem:[#allocation2 + $0xe0] sm:$0xff]   ;;  %v1237_v20 = vld [vmem:[#allocation2 + $0x68] sm:$0xff]  }
  0x18   :  { %v1231_v14 = vld [vmem:[#allocation2 + $0x18] sm:$0xff]   ;;  %v1235_v18 = vld [vmem:[#allocation2 + $0x20] sm:$0xff]   ;;  %v1238_v21 = vld [vmem:[#allocation2 + $0xe8] sm:$0xff]  }
  0x19   :  { %1068 = vmatpush3.bf16.msra.mxu0 %v1223_v6  ;;  %v1232_v15 = vld [vmem:[#allocation2 + $0x98] sm:$0xff]   ;;  %v1236_v19 = vld [vmem:[#allocation2 + $0xa0] sm:$0xff]   ;;  %v1239_v22 = vld [vmem:[#allocation2 + $0x28] sm:$0xff]  }
  0x1a   :  { %1090 = vmatpush3.bf16.msra.mxu1 %v1224_v7  ;;  %1069 = vmatprep.subr.bf16.mxu0 %v1225_v8  ;;  %v1240_v23 = vld [vmem:[#allocation2 + $0xa8] sm:$0xff]   ;;  %v1241_v24 = vld [vmem:[#allocation2 + $0x70] sm:$0xff]   ;;  %v1245_v28 = vld [vmem:[#allocation2 + $0x78] sm:$0xff]  }
  0x1b   :  { %1091 = vmatprep.subr.bf16.mxu1 %v1226_v9  ;;  %v1242_v25 = vld [vmem:[#allocation2 + $0xf0] sm:$0xff]   ;;  %v1246_v29 = vld [vmem:[#allocation2 + $0xf8] sm:$0xff]   ;;  %v32_v32 = vld [vmem:[%s1460_s0] sm:$0xff] }
  0x1c   :  { %v1243_v26 = vld [vmem:[#allocation2 + $0x30] sm:$0xff]   ;;  %v1247_v30 = vld [vmem:[#allocation2 + $0x38] sm:$0xff]   ;;  %v36_v33 = vld [vmem:[%s1460_s0 + $0x20] sm:$0xff] }
  0x1d   :  { %1070 = vmatpush3.bf16.msra.mxu0 %v1227_v10  ;;  %v1244_v27 = vld [vmem:[#allocation2 + $0xb0] sm:$0xff]   ;;  %v1248_v31 = vld [vmem:[#allocation2 + $0xb8] sm:$0xff]   ;;  %v33_v34 = vld [vmem:[%s1460_s0 + $0x8] sm:$0xff]  ;;  %v977_v35 = vcombine.low %v32_v32, %v36_v33  ;;  %v978_v36 = vcombine.high %v32_v32, %v36_v33 }
  0x1e   :  { %1092 = vmatpush3.bf16.msra.mxu1 %v1228_v11  ;;  %1071 = vmatprep.subr.bf16.mxu0 %v1229_v12  ;;  %v37_v37 = vld [vmem:[%s1460_s0 + $0x28] sm:$0xff]  ;;  %v1249_v40 = vld [vmem:[#allocation2 + $0x140] sm:$0xff]   ;;  %v1257_v48 = vld [vmem:[#allocation2 + $0x150] sm:$0xff]  }
  0x1f   :  { %1093 = vmatprep.subr.bf16.mxu1 %v1230_v13  ;;  %v979_v38 = vcombine.low %v33_v34, %v37_v37  ;;  %v980_v39 = vcombine.high %v33_v34, %v37_v37  ;;  %624 = vmatprep.mubr.bf16.mxu0 %v978_v36  ;;  %v1250_v41 = vld [vmem:[#allocation2 + $0x1c0] sm:$0xff]   ;;  %v1253_v44 = vld [vmem:[#allocation2 + $0x148] sm:$0xff]   ;;  %v1258_v49 = vld [vmem:[#allocation2 + $0x1d0] sm:$0xff]  }
  0x20   :  { %v1251_v42 = vld [vmem:[#allocation2 + $0x100] sm:$0xff]   ;;  %v1254_v45 = vld [vmem:[#allocation2 + $0x1c8] sm:$0xff]   ;;  %v1259_v50 = vld [vmem:[#allocation2 + $0x110] sm:$0xff]  }
  0x21   :  { %1072 = vmatpush3.bf16.msra.mxu0 %v1231_v14  ;;  %665 = vmatprep.mubr.bf16.mxu1 %v980_v39  ;;  %v1252_v43 = vld [vmem:[#allocation2 + $0x180] sm:$0xff]   ;;  %v1255_v46 = vld [vmem:[#allocation2 + $0x108] sm:$0xff]   ;;  %v1260_v51 = vld [vmem:[#allocation2 + $0x190] sm:$0xff]  }
  0x22   :  { %1094 = vmatpush3.bf16.msra.mxu1 %v1232_v15  ;;  %1073 = vmatprep.subr.bf16.mxu0 %v1233_v16  ;;  %v1256_v47 = vld [vmem:[#allocation2 + $0x188] sm:$0xff]   ;;  %v1261_v52 = vld [vmem:[#allocation2 + $0x158] sm:$0xff]   ;;  %v1265_v56 = vld [vmem:[#allocation2 + $0x160] sm:$0xff]  }
  0x23   :  { %1095 = vmatprep.subr.bf16.mxu1 %v1234_v17  ;;  %v1262_v53 = vld [vmem:[#allocation2 + $0x1d8] sm:$0xff]   ;;  %v1266_v57 = vld [vmem:[#allocation2 + $0x1e0] sm:$0xff]   ;;  %v1269_v60 = vld [vmem:[#allocation2 + $0x168] sm:$0xff]   ;;  %v1324_v17 = vmov 0.0  }
  0x24   :  { %v1263_v54 = vld [vmem:[#allocation2 + $0x118] sm:$0xff]   ;;  %v1267_v58 = vld [vmem:[#allocation2 + $0x120] sm:$0xff]   ;;  %v1270_v61 = vld [vmem:[#allocation2 + $0x1e8] sm:$0xff]  }
  0x25   :  { %1074 = vmatpush3.bf16.msra.mxu0 %v1235_v18  ;;  %v1264_v55 = vld [vmem:[#allocation2 + $0x198] sm:$0xff]   ;;  %v1268_v59 = vld [vmem:[#allocation2 + $0x1a0] sm:$0xff]   ;;  %v1271_v62 = vld [vmem:[#allocation2 + $0x128] sm:$0xff]  }
  0x26   :  { %1096 = vmatpush3.bf16.msra.mxu1 %v1236_v19  ;;  %1075 = vmatprep.subr.bf16.mxu0 %v1237_v20  ;;  %v1272_v63 = vld [vmem:[#allocation2 + $0x1a8] sm:$0xff]   ;;  %v1273_v0 = vld [vmem:[#allocation2 + $0x170] sm:$0xff]   ;;  %v1277_v4 = vld [vmem:[#allocation2 + $0x178] sm:$0xff]  }
  0x27   :  { %1097 = vmatprep.subr.bf16.mxu1 %v1238_v21  ;;  %v1274_v1 = vld [vmem:[#allocation2 + $0x1f0] sm:$0xff]   ;;  %v1278_v5 = vld [vmem:[#allocation2 + $0x1f8] sm:$0xff]   ;;  %v1281_v16 = vld [vmem:[%s1462_s2] sm:$0xff]  }
  0x28   :  { %v1275_v2 = vld [vmem:[#allocation2 + $0x130] sm:$0xff]   ;;  %v1279_v6 = vld [vmem:[#allocation2 + $0x138] sm:$0xff]   ;;  %v1282_v18 = vld [vmem:[%s1462_s2 + $0x8] sm:$0xff]  }
  0x29   :  { %1076 = vmatpush3.bf16.msra.mxu0 %v1239_v22  ;;  %v1276_v3 = vld [vmem:[#allocation2 + $0x1b0] sm:$0xff]   ;;  %v1280_v7 = vld [vmem:[#allocation2 + $0x1b8] sm:$0xff]   ;;  %v1285_v21 = vld [vmem:[%s1462_s2 + $0x20] sm:$0xff]  }
  0x2a   :  { %1098 = vmatpush3.bf16.msra.mxu1 %v1240_v23  ;;  %1077 = vmatprep.subr.bf16.mxu0 %v1241_v24  ;;  %v34_v8 = vld [vmem:[%s1460_s0 + $0x10] sm:$0xff]  ;;  %v35_v12 = vld [vmem:[%s1460_s0 + $0x18] sm:$0xff]  ;;  %v1286_v22 = vld [vmem:[%s1462_s2 + $0x28] sm:$0xff]  }
  0x2b   :  { %1099 = vmatprep.subr.bf16.mxu1 %v1242_v25  ;;  %v38_v9 = vld [vmem:[%s1460_s0 + $0x30] sm:$0xff]  ;;  %v39_v13 = vld [vmem:[%s1460_s0 + $0x38] sm:$0xff]  ;;  %v1289_v25 = vld [vmem:[%s1463_s3] sm:$0xff]  }
  0x2c   :  { %v981_v10 = vcombine.low %v34_v8, %v38_v9  ;;  %v982_v11 = vcombine.high %v34_v8, %v38_v9  ;;  %v983_v14 = vcombine.low %v35_v12, %v39_v13  ;;  %v984_v15 = vcombine.high %v35_v12, %v39_v13  ;;  %v1283_v19 = vld [vmem:[%s1462_s2 + $0x10] sm:$0xff]   ;;  %v1284_v20 = vld [vmem:[%s1462_s2 + $0x18] sm:$0xff]  }
  0x2d   :  { %1078 = vmatpush3.bf16.msra.mxu0 %v1243_v26  ;;  %v1287_v23 = vld [vmem:[%s1462_s2 + $0x30] sm:$0xff]   ;;  %v1288_v24 = vld [vmem:[%s1462_s2 + $0x38] sm:$0xff]   ;;  %v1290_v26 = vld [vmem:[%s1463_s3 + $0x8] sm:$0xff]  }
  0x2e   :  { %1100 = vmatpush3.bf16.msra.mxu1 %v1244_v27  ;;  %1079 = vmatprep.subr.bf16.mxu0 %v1245_v28  ;;  %v1291_v27 = vld [vmem:[%s1463_s3 + $0x10] sm:$0xff]   ;;  %v1292_v28 = vld [vmem:[%s1463_s3 + $0x18] sm:$0xff]  }
  0x2f   :  { %1101 = vmatprep.subr.bf16.mxu1 %v1246_v29  ;;  %v1293_v29 = vld [vmem:[%s1463_s3 + $0x20] sm:$0xff]  }
  0x31   :  { %1080 = vmatpush3.bf16.msra.mxu0 %v1247_v30  ;;  %v1294_v30 = vld [vmem:[%s1463_s3 + $0x28] sm:$0xff]  }
  0x32   :  { %1102 = vmatpush3.bf16.msra.mxu1 %v1248_v31  ;;  %1109 = vmatprep.subr.bf16.mxu0 %v1249_v40 }
  0x33   :  { %1131 = vmatprep.subr.bf16.mxu1 %v1250_v41 }
  0x34   :  { %625 = vmatmul.mubr.bf16.vlgmr.msra.gmra.mrb[0].mxu0 %v977_v35 }
  0x35   :  { %666 = vmatmul.mubr.bf16.vlgmr.msra.gmra.mrb[0].mxu1 %v979_v38  ;;  %1110 = vmatpush3.bf16.msra.mxu0 %v1251_v42 }
  0x36   :  { %1132 = vmatpush3.bf16.msra.mxu1 %v1252_v43  ;;  %1111 = vmatprep.subr.bf16.mxu0 %v1253_v44 }
  0x37   :  { %1133 = vmatprep.subr.bf16.mxu1 %v1254_v45  ;;  %706 = vmatprep.mubr.bf16.mxu0 %v982_v11 }
  0x38   :  { %747 = vmatprep.mubr.bf16.mxu1 %v984_v15 }
  0x39   :  { %1112 = vmatpush3.bf16.msra.mxu0 %v1255_v46 }
  0x3a   :  { %1134 = vmatpush3.bf16.msra.mxu1 %v1256_v47  ;;  %1113 = vmatprep.subr.bf16.mxu0 %v1257_v48 }
  0x3b   :  { %1135 = vmatprep.subr.bf16.mxu1 %v1258_v49 }
  0x3d   :  { %1114 = vmatpush3.bf16.msra.mxu0 %v1259_v50 }
  0x3e   :  { %1136 = vmatpush3.bf16.msra.mxu1 %v1260_v51  ;;  %1115 = vmatprep.subr.bf16.mxu0 %v1261_v52 }
  0x3f   :  { %1137 = vmatprep.subr.bf16.mxu1 %v1262_v53 }
  0x41   :  { %1116 = vmatpush3.bf16.msra.mxu0 %v1263_v54 }
  0x42   :  { %1138 = vmatpush3.bf16.msra.mxu1 %v1264_v55  ;;  %1117 = vmatprep.subr.bf16.mxu0 %v1265_v56 }
  0x43   :  { %1139 = vmatprep.subr.bf16.mxu1 %v1266_v57 }
  0x45   :  { %1118 = vmatpush3.bf16.msra.mxu0 %v1267_v58 }
  0x46   :  { %1140 = vmatpush3.bf16.msra.mxu1 %v1268_v59  ;;  %1119 = vmatprep.subr.bf16.mxu0 %v1269_v60 }
  0x47   :  { %1141 = vmatprep.subr.bf16.mxu1 %v1270_v61 }
  0x49   :  { %1120 = vmatpush3.bf16.msra.mxu0 %v1271_v62  ;;  %v1326_v62 = vmov 0  }
  0x4a   :  { %1142 = vmatpush3.bf16.msra.mxu1 %v1272_v63  ;;  %1121 = vmatprep.subr.bf16.mxu0 %v1273_v0  ;;  %v1295_v0 = vld [vmem:[%s1463_s3 + $0x30] sm:$0xff]  }
  0x4b   :  { %1143 = vmatprep.subr.bf16.mxu1 %v1274_v1  ;;  %v1296_v1 = vld [vmem:[%s1463_s3 + $0x38] sm:$0xff]  }
  0x4d   :  { %1122 = vmatpush3.bf16.msra.mxu0 %v1275_v2 }
  0x4e   :  { %1144 = vmatpush3.bf16.msra.mxu1 %v1276_v3  ;;  %1123 = vmatprep.subr.bf16.mxu0 %v1277_v4 }
  0x4f   :  { %1145 = vmatprep.subr.bf16.mxu1 %v1278_v5 }
  0x51   :  { %1124 = vmatpush3.bf16.msra.mxu0 %v1279_v6 }
  0x52   :  { %1146 = vmatpush3.bf16.msra.mxu1 %v1280_v7  ;;  %1171 = vmatprep.subr.bf16.mxu0 %v1324_v17 }
  0x53   :  { %1191 = vmatprep.subr.bf16.mxu1 %v1324_v17 }
  0x54   :  { %707 = vmatmul.mubr.bf16.vlgmr.msra.gmra.mrb[4].mxu0 %v981_v10 }
  0x55   :  { %748 = vmatmul.mubr.bf16.vlgmr.msra.gmra.mrb[4].mxu1 %v983_v14  ;;  %1172 = vmatpush3.bf16.msra.mxu0 %v1281_v16 }
  0x56   :  { %1173 = vmatprep.subr.bf16.mxu0 %v1324_v17  ;;  %1187 = vmatprep.mubr.msk.bf16.mxu0 %vm1325_vm0, %v1324_v17 }
  0x57   :  { %1207 = vmatprep.mubr.msk.bf16.mxu1 %vm1325_vm0, %v1324_v17  ;;  %1192 = vmatpush3.bf16.msra.mxu1 %v1289_v25 }
  0x58   :  { %1193 = vmatprep.subr.bf16.mxu1 %v1324_v17 }
  0x59   :  { %1174 = vmatpush3.bf16.msra.mxu0 %v1282_v18 }
  0x5a   :  { %1175 = vmatprep.subr.bf16.mxu0 %v1324_v17 }
  0x5b   :  { %1194 = vmatpush3.bf16.msra.mxu1 %v1290_v26 }
  0x5c   :  { %1195 = vmatprep.subr.bf16.mxu1 %v1324_v17 }
  0x5d   :  { %1176 = vmatpush3.bf16.msra.mxu0 %v1283_v19 }
  0x5e   :  { %1177 = vmatprep.subr.bf16.mxu0 %v1324_v17 }
  0x5f   :  { %1196 = vmatpush3.bf16.msra.mxu1 %v1291_v27 }
  0x60   :  { %1197 = vmatprep.subr.bf16.mxu1 %v1324_v17 }
  0x61   :  { %1178 = vmatpush3.bf16.msra.mxu0 %v1284_v20 }
  0x62   :  { %1179 = vmatprep.subr.bf16.mxu0 %v1324_v17 }
  0x63   :  { %1198 = vmatpush3.bf16.msra.mxu1 %v1292_v28 }
  0x64   :  { %1199 = vmatprep.subr.bf16.mxu1 %v1324_v17 }
  0x65   :  { %1180 = vmatpush3.bf16.msra.mxu0 %v1285_v21 }
  0x66   :  { %1181 = vmatprep.subr.bf16.mxu0 %v1324_v17 }
  0x67   :  { %1200 = vmatpush3.bf16.msra.mxu1 %v1293_v29 }
  0x68   :  { %1201 = vmatprep.subr.bf16.mxu1 %v1324_v17 }
  0x69   :  { %1182 = vmatpush3.bf16.msra.mxu0 %v1286_v22 }
  0x6a   :  { %1183 = vmatprep.subr.bf16.mxu0 %v1324_v17 }
  0x6b   :  { %1202 = vmatpush3.bf16.msra.mxu1 %v1294_v30 }
  0x6c   :  { %1203 = vmatprep.subr.bf16.mxu1 %v1324_v17 }
  0x6d   :  { %1184 = vmatpush3.bf16.msra.mxu0 %v1287_v23 }
  0x6e   :  { %1185 = vmatprep.subr.bf16.mxu0 %v1324_v17 }
  0x6f   :  { %1204 = vmatpush3.bf16.msra.mxu1 %v1295_v0 }
  0x70   :  { %1205 = vmatprep.subr.bf16.mxu1 %v1324_v17 }
  0x71   :  { %1186 = vmatpush3.bf16.msra.mxu0 %v1288_v24 }
  0x73   :  { %1206 = vmatpush3.bf16.msra.mxu1 %v1296_v1 }
 0x107   :  { %v1081_v31 = vpop.f32.mrb[0].mxu0 }
 0x108   :  { %v1103_v32 = vpop.f32.mrb[0].mxu1  ;;  %v1082_v33 = vpop.f32.mrb[1].mxu0 }
 0x109   :  { %v1083_v34 = vadd.f32 %v1082_v33, %v1081_v31  ;;  %v1104_v35 = vpop.f32.mrb[1].mxu1  ;;  %v1084_v36 = vpop.f32.mrb[2].mxu0 }
 0x10a   :  { %v1105_v37 = vadd.f32 %v1104_v35, %v1103_v32  ;;  %v1106_v38 = vpop.f32.mrb[2].mxu1  ;;  %v1085_v39 = vpop.f32.mrb[3].mxu0 }
 0x10b   :  { %v1086_v40 = vadd.f32 %v1085_v39, %v1084_v36  ;;  %v1107_v41 = vpop.f32.mrb[3].mxu1 }
 0x10c   :  { %v668_v42 = vadd.f32 %v1105_v37, %v1083_v34  ;;  %v1108_v43 = vadd.f32 %v1107_v41, %v1106_v38 }
 0x10e   :  { %v671_v44 = vadd.f32 %v1108_v43, %v1086_v40 }
 0x127   :  { %v1125_v45 = vpop.f32.mrb[4].mxu0 }
 0x128   :  { %v1147_v46 = vpop.f32.mrb[4].mxu1  ;;  %v1126_v47 = vpop.f32.mrb[5].mxu0 }
 0x129   :  { %v1127_v48 = vadd.f32 %v1126_v47, %v1125_v45  ;;  %v1148_v49 = vpop.f32.mrb[5].mxu1  ;;  %v1128_v50 = vpop.f32.mrb[6].mxu0 }
 0x12a   :  { %v1149_v51 = vadd.f32 %v1148_v49, %v1147_v46  ;;  %v1150_v52 = vpop.f32.mrb[6].mxu1  ;;  %v1129_v53 = vpop.f32.mrb[7].mxu0 }
 0x12b   :  { %v709_v54 = vadd.f32 %v1127_v48, %v668_v42  ;;  %v1130_v55 = vadd.f32 %v1129_v53, %v1128_v50  ;;  %v1151_v56 = vpop.f32.mrb[7].mxu1 }
 0x12c   :  { %v1152_v57 = vadd.f32 %v1151_v56, %v1150_v52 }
 0x12d   :  { %v750_v58 = vadd.f32 %v1149_v51, %v709_v54  ;;  %v712_v59 = vadd.f32 %v1130_v55, %v671_v44 }
 0x12f   :  { %v753_v60 = vadd.f32 %v1152_v57, %v712_v59 }
 0x131   :  { %v756_v61 = vpack.c.bf16 %v753_v60, %v750_v58 }
 0x133   :  { %v757_v63 = vmax.bf16 %v1326_v62, %v756_v61 }
 0x135   :  { %1188 = vmatmul.mubr.bf16.vlgmr.msra.gmra.mrb[8].mxu0 %v757_v63 }
 0x208   :  { %v856_v2 = vpop.f32.mrb[8].mxu0 }
 0x209   :  { %v1189_v3 = vpop.f32.mrb[9].mxu0 }
 0x20a   :  { %v859_v4 = vpop.f32.mrb[10].mxu0 }
 0x20b   :  { %v863_v5 = vpack.c.bf16 %v859_v4, %v856_v2  ;;  %v1190_v6 = vpop.f32.mrb[11].mxu0 }
 0x20d   :  { %v864_v7 = vmax.bf16 %v1326_v62, %v863_v5 }
 0x20f   :  { %1208 = vmatmul.mubr.bf16.vlgmr.msra.gmra.mrb[8].mxu1 %v864_v7 }
 0x2e2   :  { %v963_v8 = vpop.f32.mrb[8].mxu1 }
 0x2e3   :  { %970 = vst [vmem:[%s1464_s4] sm:$0xff] %v963_v8  ;;  %v1209_v9 = vpop.f32.mrb[9].mxu1 }
 0x2e4   :  { %v966_v10 = vpop.f32.mrb[10].mxu1 }
 0x2e5   :  { %971 = vst [vmem:[%s1464_s4 + $0x8] sm:$0xff] %v966_v10  ;;  %v1210_v11 = vpop.f32.mrb[11].mxu1 }
 0x2e6   :  { %976 = vsyncpa [#allocation3], 1 }

</bundles_post_ra>
